<compile_context>
chip_gen: v7x
topology: tpu7x:2x2x1
jax: 0.10.0
libtpu: 0.0.40
codegen_flags: <defaults>
</compile_context>

<pallas_src>
import functools

import jax
import jax.numpy as jnp
import numpy as np
from jax.experimental import pallas as pl
from jax.experimental.pallas import tpu as pltpu

EPS = 1e-8
_LANES = 128


# ---------------------------------------------------------------------------
# VMEM budgeting / tile selection
# ---------------------------------------------------------------------------
def _vmem_budgets():
    """Generation-gated (per-block input budget, vmem_limit_bytes)."""
    vmem_phys = None
    try:
        info = pltpu.get_tpu_info()
        cap = getattr(info, "vmem_capacity_bytes", None)
        if cap:
            vmem_phys = int(cap)
    except Exception:
        vmem_phys = None
    if vmem_phys is not None and vmem_phys >= (96 << 20):
        # v5e / v6e: 128 MiB physical VMEM -> use more of it for big-F inputs.
        return 48 << 20, 64 << 20
    # v7x (64 MiB physical per TensorCore) or unknown -> stay safely below 64 MiB.
    return 36 << 20, 48 << 20


def _pick_time_tile(F, T, itemsize, block_budget_bytes, max_tile_t):
    """Largest 128-multiple time tile with 2 inputs x 2 buffers under the budget.
    No divisibility requirement on T (cdiv grid + in-kernel tail masking)."""
    t_ceil = ((T + _LANES - 1) // _LANES) * _LANES
    by_budget = (block_budget_bytes // (4 * F * itemsize)) // _LANES * _LANES
    return max(_LANES, min(by_budget, max_tile_t, t_ceil))


# ---------------------------------------------------------------------------
# Kernels
# ---------------------------------------------------------------------------
def _fold_to_lanes(acc):
    """(1, tile_t) -> (1, 128) by summing 128-wide lane chunks (static slices)."""
    tt = acc.shape[-1]
    out = acc[:, 0:_LANES]
    for i in range(1, tt // _LANES):
        out = out + acc[:, i * _LANES:(i + 1) * _LANES]
    return out


def _accumulate(p_ref, t_ref, m_ref, o_ref, a1, a2, a3, *,
                tile_t, per_chunk, seq_len, needs_tail):
    c = pl.program_id(1)          # time-chunk (TensorCore-parallel) index
    k = pl.program_id(2)          # time tile within chunk (reduction axis)

    @pl.when(k == 0)
    def _():
        a1[...] = jnp.zeros_like(a1)
        a2[...] = jnp.zeros_like(a2)
        a3[...] = jnp.zeros_like(a3)

    start = (c * per_chunk + k) * tile_t          # logical lane offset of this tile

    p = p_ref[0].astype(jnp.float32)
    t = t_ref[0].astype(jnp.float32)

    valid = None
    if needs_tail:
        lane = jax.lax.broadcasted_iota(jnp.int32, (1, tile_t), 1)
        valid = (start + lane) < seq_len
        # Zero out-of-bounds garbage BEFORE exp: exp(garbage) may be inf and
        # 0 * inf = NaN would survive any later masking.
        p = jnp.where(valid, p, 0.0)
        t = jnp.where(valid, t, 0.0)

    l1 = jnp.abs(p - t)            # |pred - target|
    pe = jnp.exp(p)                # pred magnitude   (EUP)
    te = jnp.exp(t)                # target magnitude (EUP)
    d2 = (pe - te) ** 2            # (pred_mag - target_mag)^2  (+eps cancels)
    t2 = (te + EPS) ** 2           # target_mag^2

    r1 = jnp.sum(l1, axis=0, keepdims=True)       # (1, tile_t)
    r2 = jnp.sum(d2, axis=0, keepdims=True)
    r3 = jnp.sum(t2, axis=0, keepdims=True)

    if m_ref is not None:
        # Whole (1, 1, t_cover) mask row is resident; slice the current tile.
        off = pl.multiple_of(start, _LANES)
        m = m_ref[0, :, pl.ds(off, tile_t)].astype(jnp.float32)   # (1, tile_t)
        a1[...] += r1 * m            # mask is zero-padded past T -> tail handled
        a2[...] += r2 * m
        a3[...] += r3 * m
    else:
        if valid is not None:
            # zeroed inputs give exp(0)=1 -> t2 ~ 1 at invalid lanes; drop them.
            r3 = jnp.where(valid, r3, 0.0)
        a1[...] += r1                # l1/d2 are exactly 0 at invalid lanes
        a2[...] += r2
        a3[...] += r3

    @pl.when(k == pl.num_programs(2) - 1)
    def _():
        o_ref[...] = jnp.concatenate(
            [_fold_to_lanes(a1[...]),
             _fold_to_lanes(a2[...]),
             _fold_to_lanes(a3[...])], axis=0)[None, None]


def _unmasked_kernel(p_ref, t_ref, o_ref, a1, a2, a3, *,
                     tile_t, per_chunk, seq_len, needs_tail):
    _accumulate(p_ref, t_ref, None, o_ref, a1, a2, a3,
                tile_t=tile_t, per_chunk=per_chunk,
                seq_len=seq_len, needs_tail=needs_tail)


def _masked_kernel(p_ref, t_ref, m_ref, o_ref, a1, a2, a3, *,
                   tile_t, per_chunk, seq_len, needs_tail):
    _accumulate(p_ref, t_ref, m_ref, o_ref, a1, a2, a3,
                tile_t=tile_t, per_chunk=per_chunk,
                seq_len=seq_len, needs_tail=needs_tail)


# ---------------------------------------------------------------------------
# Pure-JAX path (reference + tiny-input dispatch)
# ---------------------------------------------------------------------------
def _loss_jax(pred_log, target_log, mask, lambda_mag, lambda_sc, eps):
    pf = pred_log.astype(jnp.float32)
    tf = target_log.astype(jnp.float32)
    pm = jnp.exp(pf) + eps
    tm = jnp.exp(tf) + eps
    if mask is not None:
        m = mask.astype(jnp.float32)[:, None, :]
        mag = jnp.sum(jnp.abs(pf - tf) * m) / (jnp.sum(m) + eps)
        sc = jnp.sum((pm - tm) ** 2 * m) / (jnp.sum(tm ** 2 * m) + eps)
    else:
        mag = jnp.mean(jnp.abs(pf - tf))
        sc = jnp.linalg.norm(pm - tm) / (jnp.linalg.norm(tm) + eps)
    total = lambda_mag * mag + lambda_sc * sc
    return total, mag, sc


# ---------------------------------------------------------------------------
# Wrapper
# ---------------------------------------------------------------------------
def stft_log_waveform_loss(pred_log, target_log, mask=None,
                           log_min=None, log_max=None, original_len=None,
                           lambda_mag=0.5, lambda_sc=1.0, lambda_wave=0.0,
                           eps=EPS, max_tile_t=4096, min_pallas_elements=1 << 16):
    """JAX/Pallas equivalent of STFTLogWaveformLoss.forward. Returns (total, mag, sc)."""
    if lambda_wave > 0 and log_min is not None and log_max is not None \
            and original_len is not None:
        # TODO(synk): the lambda_wave > 0 branch (Griffin-Lim waveform reconstruction
        # via iterative CPU ISTFT) has no clean Pallas equivalent.
        raise NotImplementedError("lambda_wave > 0 waveform loss is not supported")

    B, F, T = pred_log.shape
    has_mask = mask is not None

    # Tiny inputs: per-grid-step overhead exceeds the work; fused XLA wins.
    if B * F * T < min_pallas_elements:
        return _loss_jax(pred_log, target_log, mask, lambda_mag, lambda_sc, eps)

    itemsize = jnp.dtype(pred_log.dtype).itemsize
    block_budget, vmem_limit = _vmem_budgets()
    tile_t = _pick_time_tile(F, T, itemsize, block_budget, max_tile_t)

    n_t = (T + tile_t - 1) // tile_t              # total time tiles (cdiv, unpadded)
    n_core = 2 if n_t >= 2 else 1                 # v7x: feed both TCs even when B==1
    per_chunk = (n_t + n_core - 1) // n_core
    t_cover = n_core * per_chunk * tile_t
    needs_tail = t_cover != T                     # any partial / redundant tile?

    def time_idx(c, k):
        # Clamp redundant tiles (odd tile counts) onto the last valid block; the
        # in-kernel validity / zero-padded mask makes their contribution zero.
        return jnp.minimum(c * per_chunk + k, n_t - 1)

    in_specs = [
        pl.BlockSpec((1, F, tile_t), lambda b, c, k: (b, 0, time_idx(c, k))),
        pl.BlockSpec((1, F, tile_t), lambda b, c, k: (b, 0, time_idx(c, k))),
    ]
    operands = [pred_log, target_log]             # native dtype (bf16 ok), no pad

    static = dict(tile_t=tile_t, per_chunk=per_chunk,
                  seq_len=T, needs_tail=needs_tail)

    if has_mask:
        m = mask.astype(jnp.float32)
        if t_cover > T:
            m = jnp.pad(m, ((0, 0), (0, t_cover - T)))   # tiny (B, T) pad only
        operands.append(m[:, None, :])                   # (B, 1, t_cover)
        # Whole per-batch mask row DMA'd once per b; sliced in-kernel with pl.ds.
        in_specs.append(pl.BlockSpec((1, 1, t_cover), lambda b, c, k: (b, 0, 0)))
        kernel = functools.partial(_masked_kernel, **static)
    else:
        kernel = functools.partial(_unmasked_kernel, **static)

    grid_spec = pltpu.PrefetchScalarGridSpec(
        num_scalar_prefetch=0,
        grid=(B, n_core, per_chunk),
        in_specs=in_specs,
        out_specs=pl.BlockSpec((1, 1, 3, _LANES), lambda b, c, k: (b, c, 0, 0)),
        scratch_shapes=[pltpu.VMEM((1, tile_t), jnp.float32)] * 3,
    )

    partials = pl.pallas_call(
        kernel,
        out_shape=jax.ShapeDtypeStruct((B, n_core, 3, _LANES), jnp.float32),
        grid_spec=grid_spec,
        compiler_params=pltpu.CompilerParams(
            # batch and time-chunk axes shard across TensorCores; time tiles reduce.
            dimension_semantics=("parallel", "parallel", "arbitrary"),
            vmem_limit_bytes=vmem_limit,
        ),
    )(*operands)

    sums = jnp.sum(partials, axis=(0, 1, 3))      # (3,) -> [sum|p-t|, sum d2, sum t2]
    s1, s2, s3 = sums[0], sums[1], sums[2]

    if has_mask:
        mag_loss = s1 / (jnp.sum(mask.astype(jnp.float32)) + eps)
        sc_loss = s2 / (s3 + eps)
    else:
        mag_loss = s1 / (B * F * T)                    # F.l1_loss mean reduction
        sc_loss = jnp.sqrt(s2) / (jnp.sqrt(s3) + eps)  # Frobenius-norm ratio

    total_loss = lambda_mag * mag_loss + lambda_sc * sc_loss
    return total_loss, mag_loss, sc_loss


# ---------------------------------------------------------------------------
# Self-test
# ---------------------------------------------------------------------------
if __name__ == "__main__":
    key = jax.random.PRNGKey(0)
    k1, k2, k3, k4, k5, k6 = jax.random.split(key, 6)
    run = functools.partial(stft_log_waveform_loss, min_pallas_elements=0)  # force kernel

    def check(got, ref, rtol=1e-5, atol=1e-6):
        for g, r in zip(got, ref):
            np.testing.assert_allclose(np.asarray(g), np.asarray(r), rtol=rtol, atol=atol)

    # --- Test 1: small masked input (ragged last tile handled in-kernel) ---
    B, F, T = 2, 16, 32
    pred = jax.random.normal(k1, (B, F, T), jnp.float32) * 0.5
    targ = jax.random.normal(k2, (B, F, T), jnp.float32) * 0.5
    lengths = jnp.array([24, 32], jnp.int32)
    mask = (jnp.arange(T)[None, :] < lengths[:, None]).astype(jnp.float32)  # (B, T)
    got = jax.block_until_ready(run(pred, targ, mask=mask))
    check(got, _loss_jax(pred, targ, mask, 0.5, 1.0, EPS))

    # --- Test 2: small unmasked input (tail validity mask in-kernel) ---
    got = jax.block_until_ready(run(pred, targ, mask=None))
    check(got, _loss_jax(pred, targ, None, 0.5, 1.0, EPS))

    # --- Test 3: unmasked, T a multiple of 128 -> no tail masking path ---
    B3, F3, T3 = 2, 48, 256
    p3 = jax.random.normal(k3, (B3, F3, T3), jnp.float32) * 0.3
    t3 = jax.random.normal(k4, (B3, F3, T3), jnp.float32) * 0.3
    got = jax.block_until_ready(run(p3, t3, mask=None))
    check(got, _loss_jax(p3, t3, None, 0.5, 1.0, EPS))

    # --- Test 4: masked, multiple time tiles (2-chunk split + clamped redundant tile) ---
    B4, F4, T4 = 2, 24, 300
    p4 = jax.random.normal(k5, (B4, F4, T4), jnp.float32) * 0.4
    t4 = jax.random.normal(k6, (B4, F4, T4), jnp.float32) * 0.4
    len4 = jnp.array([300, 200], jnp.int32)
    mask4 = (jnp.arange(T4)[None, :] < len4[:, None]).astype(jnp.float32)
    got = jax.block_until_ready(run(p4, t4, mask=mask4, max_tile_t=128))
    check(got, _loss_jax(p4, t4, mask4, 0.5, 1.0, EPS))

    # --- Test 5: unmasked, multiple time tiles (core-split + clamped tile, no mask) ---
    got = jax.block_until_ready(run(p4, t4, mask=None, max_tile_t=128))
    check(got, _loss_jax(p4, t4, None, 0.5, 1.0, EPS))

    # --- Test 6: bf16 inputs streamed end-to-end (kernel upcasts in-VMEM) ---
    p6 = p4.astype(jnp.bfloat16)
    t6 = t4.astype(jnp.bfloat16)
    got = jax.block_until_ready(run(p6, t6, mask=mask4))
    check(got, _loss_jax(p6, t6, mask4, 0.5, 1.0, EPS), rtol=1e-4, atol=1e-5)

    print("KERNEL_OK")
</pallas_src>

<mosaic_0001>
module attributes {stable_mosaic.version = 11 : i64} {
  func.func @_masked_kernel(%arg0: i32, %arg1: i32, %arg2: i32, %arg3: memref<1x16x128xf32, #tpu.memory_space<vmem>>, %arg4: memref<1x16x128xf32, #tpu.memory_space<vmem>>, %arg5: memref<1x1x128xf32, #tpu.memory_space<vmem>>, %arg6: memref<1x1x3x128xf32, #tpu.memory_space<vmem>>, %arg7: memref<1x128xf32, #tpu.memory_space<vmem>>, %arg8: memref<1x128xf32, #tpu.memory_space<vmem>>, %arg9: memref<1x128xf32, #tpu.memory_space<vmem>>) attributes {dimension_semantics = [#tpu.dimension_semantics<parallel>, #tpu.dimension_semantics<parallel>, #tpu.dimension_semantics<arbitrary>], iteration_bounds = array<i64: 2, 1, 1>, scalar_prefetch = 0 : i64, scratch_operands = 3 : i64, tpu.core_type = #tpu.core_type<tc>, window_params = [{transform_indices = @transform_0, window_bounds = array<i64: 1, 16, 128>}, {transform_indices = @transform_1, window_bounds = array<i64: 1, 16, 128>}, {transform_indices = @transform_2, window_bounds = array<i64: 1, 1, 128>}, {transform_indices = @transform_3, window_bounds = array<i64: 1, 1, 3, 128>}]} {
    %c0_i32 = arith.constant 0 : i32
    %0 = arith.cmpi eq, %arg2, %c0_i32 : i32
    %1 = arith.extui %0 : i1 to i32
    %c0_i32_0 = arith.constant 0 : i32
    %2 = arith.cmpi ne, %1, %c0_i32_0 : i32
    scf.if %2 {
      %cst_27 = arith.constant 0.000000e+00 : f32
      %57 = vector.broadcast %cst_27 : f32 to vector<1x128xf32>
      %c0_28 = arith.constant 0 : index
      %c0_29 = arith.constant 0 : index
      %58 = vector.load %arg7[%c0_28, %c0_29] : memref<1x128xf32, #tpu.memory_space<vmem>>, vector<1x128xf32>
      tpu.vector_store %arg7[%c0_28, %c0_29], %57 {strides = array<i32>} : memref<1x128xf32, #tpu.memory_space<vmem>>, vector<1x128xf32>,
      %cst_30 = arith.constant 0.000000e+00 : f32
      %59 = vector.broadcast %cst_30 : f32 to vector<1x128xf32>
      %c0_31 = arith.constant 0 : index
      %c0_32 = arith.constant 0 : index
      %60 = vector.load %arg8[%c0_31, %c0_32] : memref<1x128xf32, #tpu.memory_space<vmem>>, vector<1x128xf32>
      tpu.vector_store %arg8[%c0_31, %c0_32], %59 {strides = array<i32>} : memref<1x128xf32, #tpu.memory_space<vmem>>, vector<1x128xf32>,
      %cst_33 = arith.constant 0.000000e+00 : f32
      %61 = vector.broadcast %cst_33 : f32 to vector<1x128xf32>
      %c0_34 = arith.constant 0 : index
      %c0_35 = arith.constant 0 : index
      %62 = vector.load %arg9[%c0_34, %c0_35] : memref<1x128xf32, #tpu.memory_space<vmem>>, vector<1x128xf32>
      tpu.vector_store %arg9[%c0_34, %c0_35], %61 {strides = array<i32>} : memref<1x128xf32, #tpu.memory_space<vmem>>, vector<1x128xf32>,
    } else {
    }
    %c1_i32 = arith.constant 1 : i32
    %3 = arith.muli %arg1, %c1_i32 : i32
    %4 = arith.addi %3, %arg2 : i32
    %c128_i32 = arith.constant 128 : i32
    %5 = arith.muli %4, %c128_i32 : i32
    %c0 = arith.constant 0 : index
    %c0_1 = arith.constant 0 : index
    %c0_2 = arith.constant 0 : index
    %6 = vector.load %arg3[%c0, %c0_1, %c0_2] : memref<1x16x128xf32, #tpu.memory_space<vmem>>, vector<1x16x128xf32>
    %7 = vector.shape_cast %6 : vector<1x16x128xf32> to vector<16x128xf32>
    %c0_3 = arith.constant 0 : index
    %c0_4 = arith.constant 0 : index
    %c0_5 = arith.constant 0 : index
    %8 = vector.load %arg4[%c0_3, %c0_4, %c0_5] : memref<1x16x128xf32, #tpu.memory_space<vmem>>, vector<1x16x128xf32>
    %9 = vector.shape_cast %8 : vector<1x16x128xf32> to vector<16x128xf32>
    %10 = tpu.iota {dimensions = array<i32: 1>} : vector<1x128xi32>
    %11 = vector.broadcast %5 : i32 to vector<1x128xi32>
    %12 = arith.addi %11, %10 : vector<1x128xi32>
    %c32_i32 = arith.constant 32 : i32
    %13 = vector.broadcast %c32_i32 : i32 to vector<1x128xi32>
    %14 = arith.cmpi slt, %12, %13 : vector<1x128xi32>
    %cst = arith.constant 0.000000e+00 : f32
    %15 = vector.shape_cast %14 : vector<1x128xi1> to vector<1x128xi1>
    %16 = vector.broadcast %15 : vector<1x128xi1> to vector<16x128xi1>
    %17 = vector.broadcast %cst : f32 to vector<16x128xf32>
    %18 = arith.select %16, %7, %17 : vector<16x128xi1>, vector<16x128xf32>
    %cst_6 = arith.constant 0.000000e+00 : f32
    %19 = vector.shape_cast %14 : vector<1x128xi1> to vector<1x128xi1>
    %20 = vector.broadcast %19 : vector<1x128xi1> to vector<16x128xi1>
    %21 = vector.broadcast %cst_6 : f32 to vector<16x128xf32>
    %22 = arith.select %20, %9, %21 : vector<16x128xi1>, vector<16x128xf32>
    %23 = arith.subf %18, %22 : vector<16x128xf32>
    %24 = math.absf %23 : vector<16x128xf32>
    %25 = math.exp %18 : vector<16x128xf32>
    %26 = math.exp %22 : vector<16x128xf32>
    %27 = arith.subf %25, %26 : vector<16x128xf32>
    %28 = arith.mulf %27, %27 : vector<16x128xf32>
    %cst_7 = arith.constant 9.99999993E-9 : f32
    %29 = vector.broadcast %cst_7 : f32 to vector<16x128xf32>
    %30 = arith.addf %26, %29 : vector<16x128xf32>
    %31 = arith.mulf %30, %30 : vector<16x128xf32>
    %cst_8 = arith.constant dense<0.000000e+00> : vector<128xf32>
    %32 = vector.multi_reduction <add>, %24, %cst_8 [0] : vector<16x128xf32> to vector<128xf32>
    %33 = vector.shape_cast %32 : vector<128xf32> to vector<1x128xf32>
    %cst_9 = arith.constant dense<0.000000e+00> : vector<128xf32>
    %34 = vector.multi_reduction <add>, %28, %cst_9 [0] : vector<16x128xf32> to vector<128xf32>
    %35 = vector.shape_cast %34 : vector<128xf32> to vector<1x128xf32>
    %cst_10 = arith.constant dense<0.000000e+00> : vector<128xf32>
    %36 = vector.multi_reduction <add>, %31, %cst_10 [0] : vector<16x128xf32> to vector<128xf32>
    %37 = vector.shape_cast %36 : vector<128xf32> to vector<1x128xf32>
    %38 = tpu.assume_multiple %5, 128 : i32
    %c0_11 = arith.constant 0 : index
    %c0_12 = arith.constant 0 : index
    %39 = arith.index_cast %38 : i32 to index
    %40 = vector.load %arg5[%c0_11, %c0_12, %39] : memref<1x1x128xf32, #tpu.memory_space<vmem>>, vector<1x1x128xf32>
    %41 = vector.shape_cast %40 : vector<1x1x128xf32> to vector<1x128xf32>
    %c0_13 = arith.constant 0 : index
    %c0_14 = arith.constant 0 : index
    %42 = vector.load %arg7[%c0_13, %c0_14] : memref<1x128xf32, #tpu.memory_space<vmem>>, vector<1x128xf32>
    %43 = arith.mulf %33, %41 : vector<1x128xf32>
    %44 = arith.addf %42, %43 : vector<1x128xf32>
    %c0_15 = arith.constant 0 : index
    %c0_16 = arith.constant 0 : index
    %45 = vector.load %arg7[%c0_15, %c0_16] : memref<1x128xf32, #tpu.memory_space<vmem>>, vector<1x128xf32>
    tpu.vector_store %arg7[%c0_15, %c0_16], %44 {strides = array<i32>} : memref<1x128xf32, #tpu.memory_space<vmem>>, vector<1x128xf32>,
    %c0_17 = arith.constant 0 : index
    %c0_18 = arith.constant 0 : index
    %46 = vector.load %arg8[%c0_17, %c0_18] : memref<1x128xf32, #tpu.memory_space<vmem>>, vector<1x128xf32>
    %47 = arith.mulf %35, %41 : vector<1x128xf32>
    %48 = arith.addf %46, %47 : vector<1x128xf32>
    %c0_19 = arith.constant 0 : index
    %c0_20 = arith.constant 0 : index
    %49 = vector.load %arg8[%c0_19, %c0_20] : memref<1x128xf32, #tpu.memory_space<vmem>>, vector<1x128xf32>
    tpu.vector_store %arg8[%c0_19, %c0_20], %48 {strides = array<i32>} : memref<1x128xf32, #tpu.memory_space<vmem>>, vector<1x128xf32>,
    %c0_21 = arith.constant 0 : index
    %c0_22 = arith.constant 0 : index
    %50 = vector.load %arg9[%c0_21, %c0_22] : memref<1x128xf32, #tpu.memory_space<vmem>>, vector<1x128xf32>
    %51 = arith.mulf %37, %41 : vector<1x128xf32>
    %52 = arith.addf %50, %51 : vector<1x128xf32>
    %c0_23 = arith.constant 0 : index
    %c0_24 = arith.constant 0 : index
    %53 = vector.load %arg9[%c0_23, %c0_24] : memref<1x128xf32, #tpu.memory_space<vmem>>, vector<1x128xf32>
    tpu.vector_store %arg9[%c0_23, %c0_24], %52 {strides = array<i32>} : memref<1x128xf32, #tpu.memory_space<vmem>>, vector<1x128xf32>,
    %c0_i32_25 = arith.constant 0 : i32
    %54 = arith.cmpi eq, %arg2, %c0_i32_25 : i32
    %55 = arith.extui %54 : i1 to i32
    %c0_i32_26 = arith.constant 0 : i32
    %56 = arith.cmpi ne, %55, %c0_i32_26 : i32
    scf.if %56 {
      %c0_27 = arith.constant 0 : index
      %c0_28 = arith.constant 0 : index
      %57 = vector.load %arg7[%c0_27, %c0_28] : memref<1x128xf32, #tpu.memory_space<vmem>>, vector<1x128xf32>
      %c0_29 = arith.constant 0 : index
      %c0_30 = arith.constant 0 : index
      %58 = vector.load %arg8[%c0_29, %c0_30] : memref<1x128xf32, #tpu.memory_space<vmem>>, vector<1x128xf32>
      %c0_31 = arith.constant 0 : index
      %c0_32 = arith.constant 0 : index
      %59 = vector.load %arg9[%c0_31, %c0_32] : memref<1x128xf32, #tpu.memory_space<vmem>>, vector<1x128xf32>
      %60 = tpu.concatenate %57, %58, %59 in 0 : vector<1x128xf32>, vector<1x128xf32>, vector<1x128xf32> -> vector<3x128xf32>
      %61 = vector.shape_cast %60 : vector<3x128xf32> to vector<1x1x3x128xf32>
      %c0_33 = arith.constant 0 : index
      %c0_34 = arith.constant 0 : index
      %c0_35 = arith.constant 0 : index
      %c0_36 = arith.constant 0 : index
      %62 = vector.load %arg6[%c0_33, %c0_34, %c0_35, %c0_36] : memref<1x1x3x128xf32, #tpu.memory_space<vmem>>, vector<1x1x3x128xf32>
      tpu.vector_store %arg6[%c0_33, %c0_34, %c0_35, %c0_36], %61 {strides = array<i32>} : memref<1x1x3x128xf32, #tpu.memory_space<vmem>>, vector<1x1x3x128xf32>,
    } else {
    }
    return
  }
  func.func @transform_0(%arg0: i32, %arg1: i32, %arg2: i32) -> (i32, i32, i32) {
    %c1_i32 = arith.constant 1 : i32
    %0 = arith.muli %arg1, %c1_i32 : i32
    %1 = arith.addi %0, %arg2 : i32
    %c0_i32 = arith.constant 0 : i32
    %2 = arith.minsi %1, %c0_i32 : i32
    %c0_i32_0 = arith.constant 0 : i32
    %c0_i32_1 = arith.constant 0 : i32
    return %arg0, %c0_i32_0, %2 : i32, i32, i32
  }
  func.func @transform_1(%arg0: i32, %arg1: i32, %arg2: i32) -> (i32, i32, i32) {
    %c1_i32 = arith.constant 1 : i32
    %0 = arith.muli %arg1, %c1_i32 : i32
    %1 = arith.addi %0, %arg2 : i32
    %c0_i32 = arith.constant 0 : i32
    %2 = arith.minsi %1, %c0_i32 : i32
    %c0_i32_0 = arith.constant 0 : i32
    %c0_i32_1 = arith.constant 0 : i32
    return %arg0, %c0_i32_0, %2 : i32, i32, i32
  }
  func.func @transform_2(%arg0: i32, %arg1: i32, %arg2: i32) -> (i32, i32, i32) {
    %c0_i32 = arith.constant 0 : i32
    %c0_i32_0 = arith.constant 0 : i32
    %c0_i32_1 = arith.constant 0 : i32
    return %arg0, %c0_i32, %c0_i32_0 : i32, i32, i32
  }
  func.func @transform_3(%arg0: i32, %arg1: i32, %arg2: i32) -> (i32, i32, i32, i32) {
    %c0_i32 = arith.constant 0 : i32
    %c0_i32_0 = arith.constant 0 : i32
    %c0_i32_1 = arith.constant 0 : i32
    return %arg0, %arg1, %c0_i32, %c0_i32_0 : i32, i32, i32, i32
  }
}

</mosaic_0001>

<bundles_post_ra>
// kernel: tpu_custom_call.1
= control target key start
LH: loop header
LB: loop body
LE: loop exit
PB: predicated region body
PF: predicated region fallthrough
CT: control target
= control target key end

     0   :  { %8 = vsyncpa [#allocation6], 0  ;;  %s950_s0 = inlined_call_operand.hbm [shape: f32[2,16,32], index: 0, kind: input, shape index: {}]   ;;  %s951_s1 = inlined_call_operand.hbm [shape: f32[2,16,32], index: 1, kind: input, shape index: {}]   ;;  %s952_s2 = inlined_call_operand.vmem [shape: f32[2,1,128], index: 2, kind: input, shape index: {}]   ;;  %s953_s3 = inlined_call_operand.vmem [shape: f32[2,1,3,128], index: 3, kind: output, shape index: {}]  }
   0x1   :  { %10 = vsyncpa [#allocation6 + $0x1], 0 }
   0x2   :  { %11 = vsyncpa [#allocation8], 0 }
   0x3   :  { %13 = vsyncpa [#allocation8 + $0x1], 0  ;;  %s759_s12 = smov 0   ;;  %s761_s13 = smov 0  }
   0x4   :  { %s763_s14 = smov 0   ;;  %s765_s15 = smov 0  }
   0x5   :  { %s767_s16 = smov 0   ;;  %s769_s17 = smov 0  }
   0x6 LB: > { %s527_s18 = sadd.s32 4294967295, %s732_s17   ;;  %s38_s19 = sadd.s32 1, %s728_s16  ;;  %s732_s17 = sphi %s769_s17, %s19_s17   ;;  %s728_s16 = sphi %s767_s16, %s964_s16   ;;  %s724_s15 = sphi %s765_s15, %s963_s15   ;;  %s720_s14 = sphi %s763_s14, %s962_s14   ;;  %s716_s13 = sphi %s761_s13, %s961_s13   ;;  %s712_s12 = sphi %s759_s12, %s960_s12  }
   0x7   : > { %p40_p0 = scmp.ge.s32.totalorder %s38_s19, 2  ;;  %s53_s20 = sadd.s32 1, %s720_s14 }
   0x8   : > { %p60_p1 = scmp.ne.s32.totalorder %s720_s14, %s716_s13  ;;  %p61_p2 = scmp.eq.s32.totalorder %s732_s17, 0 }
   0x9   : > { %s966_s19 = smov (%p40_p0, %s38_s19), 0  ;;  %p66_p4 = scmp.ne.s32.totalorder %s716_s13, %s712_s12 }
   0xa   : > { %p795_p3 = por %p61_p2, %p60_p1  ;;  %s48_s22 = ssub.s32 %s728_s16, %s966_s19 }
   0xb   : > { %p67_p5 = scmp.eq.s32.totalorder %s527_s18, 0  ;;  %p51_p6 = scmp.eq.s32.totalorder %s48_s22, 0 }
   0xc   : > { %p558_p8 = scmp.lt.s32.totalorder %s732_s17, 2  ;;  %s811_s25 = sand.u32 1, %s720_s14  }
   0xd   : > { %p802_p7 = por %p67_p5, %p66_p4  ;;  %s545_s26 = sshll.u32 %s728_s16, 8 }
   0xe   : > { %s808_s24 = scalar_select %p51_p6, %s720_s14, %s53_s20  }
   0xf   : > { %s956_s23 = scalar_select %p802_p7, 1, 0 }
  0x10   : > { %s531_s27 = sshll.u32 %s811_s25, 4  ;;  %s820_s30 = scalar_lea.hbm %s950_s0, %s545_s26 }
  0x11   : > { %s182_s4 = scalar_lea.vmem [#allocation5], %s531_s27  ;;  %p826_p9 = pnand %p558_p8, %p795_p3 }
  0x12   : > { %s193_s5 = sshll.u32 %s182_s4, 4  ;;  %s179_s7 = scalar_lea.sflag [#allocation6], %s811_s25  ;;  %s830_s5 = int_to_ptr.vmem [resolvable:$true] %s193_s5 }
  0x13   : > { %s618_s8 = scalar_lea.hbm %s820_s30, 256  ;;  %p620_p11 = pneg %p826_p9 }
  0x14   : > { %p619_p10 = scmp.ne.s32.totalorder %s820_s30, %s618_s8  ;;  %s623_s11 = scalar_lea.hbm %s950_s0, 512 }
  0x15   : > { %p624_p0 = scmp.lt.u32.totalorder %s820_s30, %s950_s0  ;;  %p625_p1 = scmp.lt.u32.totalorder %s623_s11, %s618_s8 }
  0x16   : > { %p621_p12 = pnand %p620_p11, %p619_p10  ;;  %p627_p3 = scmp.lt.u32.totalorder %s618_s8, %s820_s30 }
  0x17   : > { %p626_p2 = por %p625_p1, %p624_p0 }
  0x18   : > { %p622_p13 = pneg %p621_p12 }
  0x19   : > { %p628_p4 = por %p627_p3, %p626_p2 }
  0x1b   : > { %p629_p5 = pnand %p628_p4, %p622_p13 }
  0x1d   : > { %632 = shalt.err (!%p629_p5)
}
  0x1e   : > { %s633_s20 = scalar_lea.vmem %s830_s5, 256  ;;  %s734_s21 = smov [#allocation5]  }
  0x1f   : > { %p634_p6 = scmp.ne.s32.totalorder %s830_s5, %s633_s20  ;;  %s638_s22 = sshll.u32 %s734_s21, 4  ;;  %s639_s22 = int_to_ptr.vmem [resolvable:$false] %s638_s22 }
  0x20   : > { %s640_s28 = scalar_lea.vmem %s639_s22, 512  ;;  %p641_p12 = scmp.lt.s32.totalorder %s830_s5, %s639_s22 }
  0x21   : > { %p636_p8 = pnand %p634_p6, %p620_p11  ;;  %p642_p0 = scmp.lt.s32.totalorder %s640_s28, %s633_s20 }
  0x23   : > { %p637_p10 = pneg %p636_p8  ;;  %p643_p1 = por %p642_p0, %p641_p12 }
  0x25   : > { %p644_p2 = pnand %p643_p1, %p637_p10 }
  0x27   : > { %647 = shalt.err (!%p644_p2)
}
  0x28   : > { %s735_s29 = smov 128   ;;  %s736_s4 = smov 8  }
  0x29   : > { %554 = dma.hbm_to_vmem [thread:$0]  (!%p826_p9), %s820_s30, 256, %s830_s5, %s179_s7, %s735_s29, %s735_s29, %s736_s4  }
  0x2a   : > { %p537_p13 = scmp.ge.s32.totalorder %s732_s17, 1  ;;  %p232_p3 = scmp.lt.s32.totalorder %s732_s17, 3 }
  0x2b   : > { %s874_s11 = scalar_lea.hbm %s951_s1, %s545_s26  ;;  %s207_s12 = scalar_lea.vmem [#allocation7], %s531_s27 }
  0x2c   : > { %p865_p4 = pnand %p537_p13, %p232_p3  ;;  %s218_s18 = sshll.u32 %s207_s12, 4  ;;  %s878_s18 = int_to_ptr.vmem [resolvable:$true] %s218_s18 }
  0x2d   : > { %s204_s30 = scalar_lea.sflag [#allocation8], %s811_s25  ;;  %s648_s5 = scalar_lea.hbm %s874_s11, 256 }
  0x2e   : > { %p649_p5 = scmp.ne.s32.totalorder %s874_s11, %s648_s5  ;;  %s653_s26 = scalar_lea.hbm %s951_s1, 512 }
  0x2f   : > { %p654_p10 = scmp.lt.u32.totalorder %s874_s11, %s951_s1  ;;  %p655_p12 = scmp.lt.u32.totalorder %s653_s26, %s648_s5 }
  0x30   : > { %p651_p6 = pnand %p649_p5, %p620_p11  ;;  %p657_p1 = scmp.lt.u32.totalorder %s648_s5, %s874_s11 }
  0x31   : > { %p656_p0 = por %p655_p12, %p654_p10 }
  0x32   : > { %p652_p8 = pneg %p651_p6 }
  0x33   : > { %p658_p2 = por %p657_p1, %p656_p0 }
  0x35   : > { %p659_p13 = pnand %p658_p2, %p652_p8 }
  0x37   : > { %662 = shalt.err (!%p659_p13)
}
  0x38   : > { %s663_s27 = scalar_lea.vmem %s878_s18, 256  ;;  %s737_s28 = smov [#allocation7]  }
  0x39   : > { %p664_p3 = scmp.ne.s32.totalorder %s878_s18, %s663_s27  ;;  %s668_s9 = sshll.u32 %s737_s28, 4  ;;  %s669_s9 = int_to_ptr.vmem [resolvable:$false] %s668_s9 }
  0x3a   : > { %s670_s10 = scalar_lea.vmem %s669_s9, 512  ;;  %p671_p7 = scmp.lt.s32.totalorder %s878_s18, %s669_s9 }
  0x3b   : > { %p666_p5 = pnand %p664_p3, %p620_p11  ;;  %p672_p10 = scmp.lt.s32.totalorder %s670_s10, %s663_s27 }
  0x3d   : > { %p667_p6 = pneg %p666_p5  ;;  %p673_p12 = por %p672_p10, %p671_p7 }
  0x3f   : > { %p674_p0 = pnand %p673_p12, %p667_p6 }
  0x41   : > { %677 = shalt.err (!%p674_p0)
}
  0x42   : > { %557 = dma.hbm_to_vmem [thread:$0]  (!%p826_p9), %s874_s11, 256, %s878_s18, %s204_s30, %s735_s29, %s735_s29, %s736_s4  }
  0x43   : > { %236 = sbr.rel (%p865_p4) target bundleno = 132 (0x84), region = 32  ;;  %s238_s12 = sand.u32 (!%p865_p4), 1, %s716_s13  }
  0x44   : > { %s538_s5 = sshll.u32 (!%p865_p4), %s238_s12, 4  ;;  %s239_s7 = scalar_lea.sflag (!%p865_p4), [#allocation6], %s238_s12 }
  0x45   : > { %s242_s20 = scalar_lea.vmem (!%p865_p4), [#allocation5], %s538_s5  ;;  %p959_p7 = scmp.ne.s32.totalorder (!%p865_p4), %s956_s23, 0 }
  0x4a   : > { %703 = dma.done.wait (%p959_p7), %s239_s7, 256  }
  0x4b   : > { %705 = vsyncadd (%p959_p7), %s239_s7, 4294967040  ;;  %s248_s6 = scalar_lea.sflag [#allocation8], %s238_s12  ;;  %s251_s25 = scalar_lea.vmem [#allocation7], %s538_s5 }
  0x4c   : > { %707 = dma.done.wait (%p959_p7), %s248_s6, 256  }
  0x4d   : > { %709 = vsyncadd (%p959_p7), %s248_s6, 4294967040  ;;  %v313_v0 = vlaneseq  ;;  %v738_v1 = vmov 0.0   ;;  %v309_v3 = vld [vmem:[%s242_s20] sm:$0xff]  ;;  %v310_v4 = vld [vmem:[%s242_s20 + $0x8] sm:$0xff]  ;;  %p290_p9 = scmp.lt.s32.totalorder %s724_s15, 1  ;;  %vm399_vm1 = vcmask 1040384  }
  0x4e   : > { %304 = vst [vmem:[#allocation2] sm:$0x1] %v738_v1  ;;  %305 = vst [vmem:[#allocation3] sm:$0x1] %v738_v1  ;;  %v311_v5 = vld [vmem:[%s251_s25] sm:$0xff]  ;;  %v312_v6 = vld [vmem:[%s251_s25 + $0x8] sm:$0xff] }
  0x4f   : > { %306 = vst [vmem:[#allocation4] sm:$0x1] %v738_v1  ;;  %v314_v2 = vand.u32 127, %v313_v0  ;;  %s968_s15 = smov (!%p290_p9, %s724_s15), 1  ;;  %vm401_vm2 = vcmask 1041408  }
  0x50   : > { %s292_s4 = scalar_lea.vmem %s952_s2, %s968_s15  ;;  %s540_s8 = sshll.u32 %s968_s15, 2 }
  0x51   : > { %vm317_vm0 = vcmp.lt.s32.totalorder %v314_v2, 32  ;;  %v368_v31 = vld [vmem:[%s292_s4] sm:$0x1]  ;;  %s299_s30 = scalar_lea.vmem %s953_s3, %s540_s8 }
  0x52   : > { %v320_v7 = vsel %vm317_vm0, %v309_v3, 0.0  ;;  %v321_v8 = vsel %vm317_vm0, %v310_v4, 0.0  ;;  %v322_v9 = vsel %vm317_vm0, %v311_v5, 0.0  ;;  %v323_v10 = vsel %vm317_vm0, %v312_v6, 0.0 }
  0x53   : > { %v324_v11 = vsub.f32 %v320_v7, %v322_v9  ;;  %v328_v12 = vmul.f32 1.442695, %v320_v7  ;;  %v330_v13 = vmul.f32 1.442695, %v321_v8  ;;  %v325_v14 = vsub.f32 %v321_v8, %v323_v10 }
  0x54   : > { %v332_v15 = vmul.f32 1.442695, %v322_v9  ;;  %v334_v16 = vmul.f32 1.442695, %v323_v10 }
  0x55   : > { %v326_v17 = vand.u32 2147483647, %v324_v11  ;;  %610 = vpow2.f32 %v328_v12  ;;  %v327_v18 = vand.u32 2147483647, %v325_v14  ;;  %v369_v37 = vld [vmem:[#allocation2] sm:$0x1] }
  0x56   : > { %612 = vpow2.f32 %v330_v13  ;;  %v373_v56 = vld [vmem:[#allocation3] sm:$0x1]  ;;  %v377_v57 = vld [vmem:[#allocation4] sm:$0x1] }
  0x57   : > { %614 = vpow2.f32 %v332_v15  ;;  %v344_v19 = vadd.f32 %v327_v18, %v326_v17 }
  0x58   : > { %616 = vpow2.f32 %v334_v16 }
  0x59   : > { %v345_v20 = vrot.slane %v344_v19, 4 }
  0x5b   : > { %v346_v21 = vadd.f32 %v345_v20, %v344_v19 }
  0x5d   : > { %v347_v22 = vrot.slane %v346_v21, 2 }
  0x5f   : > { %v611_v23 = vpop.eup %610  ;;  %v348_v25 = vadd.f32 %v347_v22, %v346_v21 }
  0x60   : > { %v613_v24 = vpop.eup %612 }
  0x61   : > { %v615_v26 = vpop.eup %614  ;;  %v349_v28 = vrot.slane %v348_v25, 1 }
  0x62   : > { %v617_v27 = vpop.eup %616  ;;  %v336_v29 = vsub.f32 %v611_v23, %v615_v26  ;;  %v340_v30 = vadd.f32 1e-08, %v615_v26 }
  0x63   : > { %v337_v32 = vsub.f32 %v613_v24, %v617_v27  ;;  %v341_v33 = vadd.f32 1e-08, %v617_v27  ;;  %v350_v34 = vadd.f32 %v349_v28, %v348_v25 }
  0x64   : > { %v338_v35 = vmul.f32 %v336_v29, %v336_v29  ;;  %v342_v36 = vmul.f32 %v340_v30, %v340_v30 }
  0x65   : > { %v339_v38 = vmul.f32 %v337_v32, %v337_v32  ;;  %v343_v39 = vmul.f32 %v341_v33, %v341_v33  ;;  %v370_v40 = vmul.f32 %v368_v31, %v350_v34 }
  0x67   : > { %v351_v41 = vadd.f32 %v339_v38, %v338_v35  ;;  %v358_v42 = vadd.f32 %v343_v39, %v342_v36  ;;  %v371_v43 = vadd.f32 %v370_v40, %v369_v37 }
  0x69   : > { %v352_v44 = vrot.slane %v351_v41, 4  ;;  %v359_v45 = vrot.slane %v358_v42, 4  ;;  %372 = vst [vmem:[#allocation2] sm:$0x1] %v371_v43 }
  0x6b   : > { %v353_v46 = vadd.f32 %v352_v44, %v351_v41  ;;  %v360_v47 = vadd.f32 %v359_v45, %v358_v42 }
  0x6d   : > { %v354_v48 = vrot.slane %v353_v46, 2  ;;  %v361_v49 = vrot.slane %v360_v47, 2 }
  0x6f   : > { %v355_v50 = vadd.f32 %v354_v48, %v353_v46  ;;  %v362_v51 = vadd.f32 %v361_v49, %v360_v47 }
  0x70   : > { %v384_v62 = vld [vmem:[#allocation2] sm:$0x1] }
  0x71   : > { %v356_v52 = vrot.slane %v355_v50, 1  ;;  %v363_v53 = vrot.slane %v362_v51, 1 }
  0x73   : > { %v357_v54 = vadd.f32 %v356_v52, %v355_v50  ;;  %v364_v55 = vadd.f32 %v363_v53, %v362_v51 }
  0x75   : > { %v374_v58 = vmul.f32 %v368_v31, %v357_v54  ;;  %v378_v59 = vmul.f32 %v368_v31, %v364_v55 }
  0x77   : > { %v375_v60 = vadd.f32 %v374_v58, %v373_v56  ;;  %v379_v61 = vadd.f32 %v378_v59, %v377_v57 }
  0x79   : > { %376 = vst [vmem:[#allocation3] sm:$0x1] %v375_v60  ;;  %380 = vst [vmem:[#allocation4] sm:$0x1] %v379_v61 }
  0x80   : > { %v541_v63 = vld [vmem:[#allocation3] ss:$0 sm:$0xff]  ;;  %v542_v0 = vld [vmem:[#allocation4] ss:$0 sm:$0xff] }
  0x81   : > { %v400_v1 = vsel %vm399_vm1, %v384_v62, %v541_v63 }
  0x82   : > { %v402_v2 = vsel %vm401_vm2, %v400_v1, %v542_v0 }
  0x83   : > { %403 = vst [vmem:[%s299_s30] sm:$0x7] %v402_v2 }
  0x84 PF: > { %s19_s17 = sadd.s32 1, %s732_s17   ;;  %s960_s12 = smov %s716_s13 }
  0x85   : > { %p16_p11 = scmp.ge.s32.totalorder %s19_s17, 4   ;;  %s961_s13 = smov %s720_s14 }
  0x86   : > { %s962_s14 = smov %s808_s24  ;;  %s963_s15 = smov %s728_s16 }
  0x87   : > { %s964_s16 = smov %s966_s19  ;;  %18 = sbr.rel (!%p16_p11) target bundleno = 6 (0x6), region = 97 }
  0x8e   :  { %429 = vsyncpa [#allocation6], 1 }
  0x8f   :  { %431 = vsyncpa [#allocation6 + $0x1], 1 }
  0x90   :  { %432 = vsyncpa [#allocation8], 1 }
  0x91   :  { %434 = vsyncpa [#allocation8 + $0x1], 1 }

</bundles_post_ra>
